<compile_context>
chip_gen: v7x
topology: tpu7x:2x2x1
jax: 0.10.0
libtpu: 0.0.40
codegen_flags: <defaults>
</compile_context>

<pallas_src>
import functools

import jax
import jax.numpy as jnp
from jax.experimental import pallas as pl
from jax.experimental.pallas import tpu as pltpu


def _round_up(x, m):
    return (x + m - 1) // m * m


# --------------------------------------------------------------------------
# Kernel 1: backbone (flatten->Linear) + fc_regression + layer-0 GRU input
# gates for both directions.  grid = (B, time_blocks); weights are resident.
# --------------------------------------------------------------------------
def _backbone_head_gi0_kernel(x_ref, wbb_ref, bbb_ref, wreg_ref, breg_ref,
                              wih_ref, bih_ref, reg_ref, gi_ref, *, g3):
    x = x_ref[0]                                                # (TT, K) bf16
    feat = jnp.dot(x, wbb_ref[...],
                   preferred_element_type=jnp.float32) + bbb_ref[...]   # (TT, F) f32

    # fc_regression (the *30 is folded into wreg/breg): VPU row reduction,
    # stored lane-dense (time on lanes) into the (B, 1, T_pad) output.
    reg_ref[0, 0, :] = jnp.sum(feat * wreg_ref[...], axis=-1) + breg_ref[0, 0]

    # Layer-0 GRU input gates for both directions in one MXU matmul.
    gi = jnp.dot(feat.astype(jnp.bfloat16), wih_ref[...],
                 preferred_element_type=jnp.float32) + bih_ref[...]     # (TT, 6H) f32
    gi_ref[0, 0] = gi[:, :g3].astype(jnp.bfloat16)
    gi_ref[1, 0] = gi[:, g3:].astype(jnp.bfloat16)


def backbone_head_gi0(x, w_bb, b_bb, w_reg30, b_reg30, wih0, bih0, *,
                      feat_dim, g3, tt):
    B, t_pad, K = x.shape
    nt = t_pad // tt
    kern = functools.partial(_backbone_head_gi0_kernel, g3=g3)
    return pl.pallas_call(
        kern,
        grid=(B, nt),
        in_specs=[
            pl.BlockSpec((1, tt, K), lambda b, t: (b, t, 0)),
            # small weights: whole-array resident blocks (fetched once)
            pl.BlockSpec((K, feat_dim), lambda b, t: (0, 0)),
            pl.BlockSpec((1, feat_dim), lambda b, t: (0, 0)),
            pl.BlockSpec((1, feat_dim), lambda b, t: (0, 0)),
            pl.BlockSpec((1, 1), lambda b, t: (0, 0)),
            pl.BlockSpec((feat_dim, 2 * g3), lambda b, t: (0, 0)),
            pl.BlockSpec((1, 2 * g3), lambda b, t: (0, 0)),
        ],
        out_specs=(
            pl.BlockSpec((1, 1, tt), lambda b, t: (b, 0, t)),
            pl.BlockSpec((2, 1, tt, g3), lambda b, t: (0, b, t, 0)),
        ),
        out_shape=(
            jax.ShapeDtypeStruct((B, 1, t_pad), jnp.float32),
            jax.ShapeDtypeStruct((2, B, t_pad, g3), jnp.bfloat16),
        ),
        compiler_params=pltpu.CompilerParams(
            dimension_semantics=("parallel", "parallel"),
            vmem_limit_bytes=48 * 1024 * 1024,
        ),
    )(x, w_bb, b_bb, w_reg30, b_reg30, wih0, bih0)


# --------------------------------------------------------------------------
# Kernel 2: GRU input gates for layers >= 1 (both directions), over merged
# time-major rows (T*B, H) per direction slab of the previous layer's output.
# --------------------------------------------------------------------------
def _gi_layer_kernel(h_ref, wih_ref, bih_ref, gi_ref, *, g3):
    hf = h_ref[0]                                               # (TM, H) bf16
    hb = h_ref[1]
    gi = (jnp.dot(hf, wih_ref[0], preferred_element_type=jnp.float32)
          + jnp.dot(hb, wih_ref[1], preferred_element_type=jnp.float32)
          + bih_ref[...])                                       # (TM, 6H) f32
    gi_ref[0] = gi[:, :g3].astype(jnp.bfloat16)
    gi_ref[1] = gi[:, g3:].astype(jnp.bfloat16)


def gru_input_gates(h_all, wih, bih, *, g3, tm):
    _, R, H = h_all.shape
    nr = R // tm
    kern = functools.partial(_gi_layer_kernel, g3=g3)
    return pl.pallas_call(
        kern,
        grid=(nr,),
        in_specs=[
            pl.BlockSpec((2, tm, H), lambda r: (0, r, 0)),
            pl.BlockSpec((2, H, 2 * g3), lambda r: (0, 0, 0)),
            pl.BlockSpec((1, 2 * g3), lambda r: (0, 0)),
        ],
        out_specs=pl.BlockSpec((2, tm, g3), lambda r: (0, r, 0)),
        out_shape=jax.ShapeDtypeStruct((2, R, g3), jnp.bfloat16),
        compiler_params=pltpu.CompilerParams(
            dimension_semantics=("parallel",),
            vmem_limit_bytes=48 * 1024 * 1024,
        ),
    )(h_all, wih, bih)


# --------------------------------------------------------------------------
# Kernel 3: fused bidirectional GRU recurrence + fc_rnn head epilogue.
# Single grid step; whole gi / output slabs resident in VMEM; the two
# directions are interleaved in one fori_loop so their latencies overlap.
# --------------------------------------------------------------------------
def _gru_recurrence_kernel(gi_ref, whh_ref, bhh_ref, wfc_ref, bfc_ref,
                           h_ref, hr_ref, *, T, B, H, R, unroll):
    if T * B < R:
        # define the time-padded tail of the output slab
        h_ref[...] = jnp.zeros(h_ref.shape, h_ref.dtype)

    gi_f = gi_ref.at[0]
    gi_b = gi_ref.at[1]
    out_f = h_ref.at[0]
    out_b = h_ref.at[1]

    whh_f = whh_ref[0]                                          # (H, 3H) bf16
    whh_b = whh_ref[1]
    bhh_f = bhh_ref[0]                                          # (1, 3H) f32
    bhh_b = bhh_ref[1]

    def cell(gi, gh, h):
        # PyTorch GRU gate order: r, z, n.
        # TODO(synk): for hidden sizes that are multiples of 128, store the
        # gates as separate lane-aligned slabs instead of slicing at H / 2H.
        r = jax.nn.sigmoid(gi[:, :H] + gh[:, :H])
        z = jax.nn.sigmoid(gi[:, H:2 * H] + gh[:, H:2 * H])
        n = jnp.tanh(gi[:, 2 * H:] + r * gh[:, 2 * H:])
        return (1.0 - z) * n + z * h

    def step(t, carry):
        h_f, h_b = carry
        rf = pl.multiple_of(t * B, B)
        rb = pl.multiple_of((T - 1 - t) * B, B)
        gif = gi_f[pl.ds(rf, B), :].astype(jnp.float32)         # (B, 3H)
        gib = gi_b[pl.ds(rb, B), :].astype(jnp.float32)
        gh_f = jnp.dot(h_f.astype(jnp.bfloat16), whh_f,
                       preferred_element_type=jnp.float32) + bhh_f
        gh_b = jnp.dot(h_b.astype(jnp.bfloat16), whh_b,
                       preferred_element_type=jnp.float32) + bhh_b
        h_f = cell(gif, gh_f, h_f)
        h_b = cell(gib, gh_b, h_b)
        out_f[pl.ds(rf, B), :] = h_f.astype(jnp.bfloat16)
        out_b[pl.ds(rb, B), :] = h_b.astype(jnp.bfloat16)
        return h_f, h_b

    h0 = jnp.zeros((B, H), jnp.float32)
    jax.lax.fori_loop(0, T, step, (h0, h0), unroll=unroll)

    # fc_rnn head fused as an epilogue on the VMEM-resident output slabs.
    hf = h_ref[0].astype(jnp.float32)                           # (R, H)
    hb = h_ref[1].astype(jnp.float32)
    hr = jnp.sum(hf * wfc_ref[0] + hb * wfc_ref[1], axis=-1, keepdims=True)
    hr_ref[...] = hr + bfc_ref[0, 0]


def gru_recurrence(gi, whh, bhh, w_fc, b_fc, *, T, B, H):
    _, R, g3 = gi.shape
    unroll = next(u for u in (16, 8, 4, 2, 1) if T % u == 0)
    kern = functools.partial(_gru_recurrence_kernel, T=T, B=B, H=H, R=R,
                             unroll=unroll)
    return pl.pallas_call(
        kern,
        grid=(1,),
        in_specs=[
            pl.BlockSpec((2, R, g3), lambda i: (0, 0, 0)),
            pl.BlockSpec((2, H, g3), lambda i: (0, 0, 0)),
            pl.BlockSpec((2, 1, g3), lambda i: (0, 0, 0)),
            pl.BlockSpec((2, 1, H), lambda i: (0, 0, 0)),
            pl.BlockSpec((1, 1), lambda i: (0, 0)),
        ],
        out_specs=(
            pl.BlockSpec((2, R, H), lambda i: (0, 0, 0)),
            pl.BlockSpec((R, 1), lambda i: (0, 0)),
        ),
        out_shape=(
            jax.ShapeDtypeStruct((2, R, H), jnp.bfloat16),
            jax.ShapeDtypeStruct((R, 1), jnp.float32),
        ),
        compiler_params=pltpu.CompilerParams(
            dimension_semantics=("arbitrary",),
            vmem_limit_bytes=48 * 1024 * 1024,
        ),
    )(gi, whh, bhh, w_fc, b_fc)


# --------------------------------------------------------------------------
# Model
# --------------------------------------------------------------------------
class CustomizedRhythmNetPallas:
    def __init__(self, in_flat_dim, feat_dim, hidden, rnn_num_layers,
                 rnn_type, direction, key):
        if rnn_type == "lstm":
            raise NotImplementedError("TODO(synk): LSTM path not implemented")
        if direction == "uni":
            raise NotImplementedError("TODO(synk): 'uni' path not implemented")

        self.feat_dim = feat_dim
        self.hidden = hidden
        self.num_layers = rnn_num_layers

        g3 = 3 * hidden
        keys = iter(jax.random.split(key, 8 + 8 * rnn_num_layers))

        def init(shape, scale=0.02):
            return (scale * jax.random.normal(next(keys), shape)).astype(jnp.float32)

        # ---------------- f32 master parameters (shared with the reference) --
        self.w_bb = init((in_flat_dim, feat_dim))
        self.b_bb = init((feat_dim,))
        self.w_reg = init((feat_dim,))
        self.b_reg = init(())
        self.w_fc = init((2 * hidden,))
        self.b_fc = init(())
        self.layers = []
        for layer in range(rnn_num_layers):
            in_size = feat_dim if layer == 0 else 2 * hidden
            self.layers.append({
                "wih": init((2, in_size, g3)),
                "whh": init((2, hidden, g3)),
                "bih": init((2, g3)),
                "bhh": init((2, g3)),
            })

        # ---------------- kernel-format copies --------------------------------
        self.k_w_bb = self.w_bb.astype(jnp.bfloat16)            # (K, F)
        self.k_b_bb = self.b_bb[None, :]                        # (1, F) f32
        self.k_w_reg30 = (30.0 * self.w_reg)[None, :]           # (1, F) f32
        self.k_b_reg30 = jnp.reshape(30.0 * self.b_reg, (1, 1))
        self.k_w_fc = self.w_fc.reshape(2, 1, hidden)           # (2, 1, H) f32
        self.k_b_fc = jnp.reshape(self.b_fc, (1, 1))

        self.k_layers = []
        for layer_idx, lp in enumerate(self.layers):
            wih = lp["wih"]                                     # (2, in, 3H)
            if layer_idx == 0:
                # both directions concatenated along the gate axis -> (F, 6H)
                k_wih = jnp.concatenate([wih[0], wih[1]], axis=1).astype(jnp.bfloat16)
            else:
                # split per input part (fwd / bwd slab of previous layer),
                # concat the two directions along gates -> (2, H, 6H)
                parts = []
                for p in range(2):
                    sl = slice(p * hidden, (p + 1) * hidden)
                    parts.append(jnp.concatenate([wih[0, sl], wih[1, sl]], axis=1))
                k_wih = jnp.stack(parts).astype(jnp.bfloat16)
            k_bih = jnp.concatenate([lp["bih"][0], lp["bih"][1]])[None, :]  # (1, 6H)
            k_whh = lp["whh"].astype(jnp.bfloat16)              # (2, H, 3H)
            k_bhh = lp["bhh"][:, None, :]                       # (2, 1, 3H)
            self.k_layers.append({"wih": k_wih, "bih": k_bih,
                                  "whh": k_whh, "bhh": k_bhh})

    def __call__(self, st_maps):
        B, T, C, Hs, Ws = st_maps.shape
        in_flat = C * Hs * Ws
        F, H = self.feat_dim, self.hidden
        g3 = 3 * H

        # Tile choices: biggest time tile that fits, lane-dense blocks.
        if T <= 256:
            tt = _round_up(T, 8)
            t_pad = tt
        else:
            tt = 256
            t_pad = _round_up(T, tt)
        R = t_pad * B
        tm = R if R <= 512 else 256

        # Single bf16 cast, free (B, T, K) reshape, no transpose of the big input.
        # TODO(synk): very large flattened inputs would need K-tiling of w_bb.
        x = st_maps.reshape(B, T, in_flat).astype(jnp.bfloat16)
        if t_pad != T:
            x = jnp.pad(x, ((0, 0), (0, t_pad - T), (0, 0)))

        reg, gi0 = backbone_head_gi0(
            x, self.k_w_bb, self.k_b_bb, self.k_w_reg30, self.k_b_reg30,
            self.k_layers[0]["wih"], self.k_layers[0]["bih"],
            feat_dim=F, g3=g3, tt=tt)
        regression_output = reg[:, :, :T]                       # (B, 1, T)

        # Only the small per-frame gi tensor is re-laid out to time-major rows.
        gi = jnp.transpose(gi0, (0, 2, 1, 3)).reshape(2, R, g3)

        h_all, hr = None, None
        for layer in range(self.num_layers):
            if layer > 0:
                gi = gru_input_gates(h_all, self.k_layers[layer]["wih"],
                                     self.k_layers[layer]["bih"], g3=g3, tm=tm)
            h_all, hr = gru_recurrence(gi, self.k_layers[layer]["whh"],
                                       self.k_layers[layer]["bhh"],
                                       self.k_w_fc, self.k_b_fc,
                                       T=T, B=B, H=H)

        rnn_output_sequence = hr[:T * B, 0].reshape(T, B).transpose(1, 0)  # (B, T)

        return {"regression_output": regression_output,
                "rnn_output_sequence": rnn_output_sequence}


# --------------------------------------------------------------------------
# Pure-JAX (f32) reference
# --------------------------------------------------------------------------
def _gru_layer_ref(x_tbi, wih, whh, bih, bhh, reverse):
    Hh = whh.shape[0]

    def step(h, xx):
        gi = xx @ wih + bih
        gh = h @ whh + bhh
        r = jax.nn.sigmoid(gi[:, :Hh] + gh[:, :Hh])
        z = jax.nn.sigmoid(gi[:, Hh:2 * Hh] + gh[:, Hh:2 * Hh])
        n = jnp.tanh(gi[:, 2 * Hh:] + r * gh[:, 2 * Hh:])
        h_new = (1.0 - z) * n + z * h
        return h_new, h_new

    h0 = jnp.zeros((x_tbi.shape[1], Hh), jnp.float32)
    _, ys = jax.lax.scan(step, h0, x_tbi, reverse=reverse)
    return ys


def reference_forward(st_maps, model):
    B, T = st_maps.shape[:2]
    x = st_maps.reshape(B, T, -1).astype(jnp.float32)
    feat = x @ model.w_bb + model.b_bb                          # (B, T, F)
    reg = (feat @ model.w_reg + model.b_reg) * 30.0             # (B, T)
    regression_output = reg[:, None, :]                         # (B, 1, T)

    h = jnp.transpose(feat, (1, 0, 2))                          # (T, B, F)
    for lp in model.layers:
        outs = [_gru_layer_ref(h, lp["wih"][d], lp["whh"][d],
                               lp["bih"][d], lp["bhh"][d], reverse=(d == 1))
                for d in (0, 1)]
        h = jnp.concatenate(outs, axis=-1)                      # (T, B, 2H)

    hr = h @ model.w_fc + model.b_fc                            # (T, B)
    rnn_output_sequence = hr.transpose(1, 0)                    # (B, T)
    return {"regression_output": regression_output,
            "rnn_output_sequence": rnn_output_sequence}


# --------------------------------------------------------------------------
# main
# --------------------------------------------------------------------------
if __name__ == "__main__":
    key = jax.random.PRNGKey(0)
    k_in, k_model = jax.random.split(key)

    B, T, C, Hi, Wi = 2, 8, 3, 16, 16
    feat_dim, hidden, num_layers = 128, 32, 2

    st_maps = jax.random.normal(k_in, (B, T, C, Hi, Wi), dtype=jnp.float32)

    model = CustomizedRhythmNetPallas(
        in_flat_dim=C * Hi * Wi, feat_dim=feat_dim, hidden=hidden,
        rnn_num_layers=num_layers, rnn_type="gru", direction="bi", key=k_model)

    out = model(st_maps)
    jax.block_until_ready(out)

    assert out["regression_output"].shape == (B, 1, T)
    assert out["rnn_output_sequence"].shape == (B, T)

    ref = reference_forward(st_maps, model)
    for name in ("regression_output", "rnn_output_sequence"):
        assert bool(jnp.all(jnp.isfinite(out[name]))), name
        assert bool(jnp.allclose(out[name], ref[name], rtol=5e-2, atol=5e-2)), name

    print("KERNEL_OK")
</pallas_src>

<mosaic_0001>
module attributes {stable_mosaic.version = 11 : i64} {
  func.func @_backbone_head_gi0_kernel(%arg0: i32, %arg1: i32, %arg2: memref<1x8x768xbf16, #tpu.memory_space<vmem>>, %arg3: memref<768x128xbf16, #tpu.memory_space<vmem>>, %arg4: memref<1x128xf32, #tpu.memory_space<vmem>>, %arg5: memref<1x128xf32, #tpu.memory_space<vmem>>, %arg6: memref<1x1xf32, #tpu.memory_space<vmem>>, %arg7: memref<128x192xbf16, #tpu.memory_space<vmem>>, %arg8: memref<1x192xf32, #tpu.memory_space<vmem>>, %arg9: memref<1x1x8xf32, #tpu.memory_space<vmem>>, %arg10: memref<2x1x8x96xbf16, #tpu.memory_space<vmem>>) attributes {dimension_semantics = [#tpu.dimension_semantics<parallel>, #tpu.dimension_semantics<parallel>], iteration_bounds = array<i64: 2, 1>, scalar_prefetch = 0 : i64, scratch_operands = 0 : i64, tpu.core_type = #tpu.core_type<tc>, window_params = [{transform_indices = @transform_0, window_bounds = array<i64: 1, 8, 768>}, {pipeline_mode = #tpu.pipeline_mode<synchronous>, transform_indices = @transform_1, window_bounds = array<i64: 768, 128>}, {pipeline_mode = #tpu.pipeline_mode<synchronous>, transform_indices = @transform_2, window_bounds = array<i64: 1, 128>}, {pipeline_mode = #tpu.pipeline_mode<synchronous>, transform_indices = @transform_3, window_bounds = array<i64: 1, 128>}, {pipeline_mode = #tpu.pipeline_mode<synchronous>, transform_indices = @transform_4, window_bounds = array<i64: 1, 1>}, {pipeline_mode = #tpu.pipeline_mode<synchronous>, transform_indices = @transform_5, window_bounds = array<i64: 128, 192>}, {pipeline_mode = #tpu.pipeline_mode<synchronous>, transform_indices = @transform_6, window_bounds = array<i64: 1, 192>}, {transform_indices = @transform_7, window_bounds = array<i64: 1, 1, 8>}, {transform_indices = @transform_8, window_bounds = array<i64: 2, 1, 8, 96>}]} {
    %c0 = arith.constant 0 : index
    %c0_0 = arith.constant 0 : index
    %c0_1 = arith.constant 0 : index
    %0 = vector.load %arg2[%c0, %c0_0, %c0_1] : memref<1x8x768xbf16, #tpu.memory_space<vmem>>, vector<1x8x768xbf16>
    %1 = vector.shape_cast %0 : vector<1x8x768xbf16> to vector<8x768xbf16>
    %c0_2 = arith.constant 0 : index
    %c0_3 = arith.constant 0 : index
    %2 = vector.load %arg3[%c0_2, %c0_3] : memref<768x128xbf16, #tpu.memory_space<vmem>>, vector<768x128xbf16>
    %cst = arith.constant dense<0.000000e+00> : vector<8x128xf32>
    %3 = tpu.matmul %1, %2, %cst {dimension_numbers = #tpu.dot_dimension_numbers<[1], [0], [0], [1], [0, 0, 1, 1], [], []>} : vector<8x768xbf16>, vector<768x128xbf16>, vector<8x128xf32> -> vector<8x128xf32>
    %c0_4 = arith.constant 0 : index
    %c0_5 = arith.constant 0 : index
    %4 = vector.load %arg4[%c0_4, %c0_5] : memref<1x128xf32, #tpu.memory_space<vmem>>, vector<1x128xf32>
    %5 = vector.broadcast %4 : vector<1x128xf32> to vector<8x128xf32>
    %6 = arith.addf %3, %5 : vector<8x128xf32>
    %c0_6 = arith.constant 0 : index
    %c0_7 = arith.constant 0 : index
    %7 = vector.load %arg5[%c0_6, %c0_7] : memref<1x128xf32, #tpu.memory_space<vmem>>, vector<1x128xf32>
    %8 = vector.broadcast %7 : vector<1x128xf32> to vector<8x128xf32>
    %9 = arith.mulf %6, %8 : vector<8x128xf32>
    %cst_8 = arith.constant dense<0.000000e+00> : vector<8xf32>
    %10 = vector.multi_reduction <add>, %9, %cst_8 [1] : vector<8x128xf32> to vector<8xf32>
    %c0_9 = arith.constant 0 : index
    %c0_10 = arith.constant 0 : index
    %11 = vector.load %arg6[%c0_9, %c0_10] : memref<1x1xf32, #tpu.memory_space<vmem>>, vector<1x1xf32>
    %12 = vector.extract %11[0, 0] : f32 from vector<1x1xf32>
    %13 = vector.broadcast %12 : f32 to vector<8xf32>
    %14 = arith.addf %10, %13 : vector<8xf32>
    %c0_11 = arith.constant 0 : index
    %c0_12 = arith.constant 0 : index
    %c0_13 = arith.constant 0 : index
    %15 = vector.load %arg9[%c0_11, %c0_12, %c0_13] : memref<1x1x8xf32, #tpu.memory_space<vmem>>, vector<1x1x8xf32>
    %16 = vector.shape_cast %15 : vector<1x1x8xf32> to vector<8xf32>
    %17 = vector.shape_cast %14 : vector<8xf32> to vector<1x1x8xf32>
    tpu.vector_store %arg9[%c0_11, %c0_12, %c0_13], %17 {strides = array<i32>} : memref<1x1x8xf32, #tpu.memory_space<vmem>>, vector<1x1x8xf32>,
    %18 = arith.truncf %6 : vector<8x128xf32> to vector<8x128xbf16>
    %c0_14 = arith.constant 0 : index
    %c0_15 = arith.constant 0 : index
    %19 = vector.load %arg7[%c0_14, %c0_15] : memref<128x192xbf16, #tpu.memory_space<vmem>>, vector<128x192xbf16>
    %cst_16 = arith.constant dense<0.000000e+00> : vector<8x192xf32>
    %20 = tpu.matmul %18, %19, %cst_16 {dimension_numbers = #tpu.dot_dimension_numbers<[1], [0], [0], [1], [0, 0, 1, 1], [], []>} : vector<8x128xbf16>, vector<128x192xbf16>, vector<8x192xf32> -> vector<8x192xf32>
    %c0_17 = arith.constant 0 : index
    %c0_18 = arith.constant 0 : index
    %21 = vector.load %arg8[%c0_17, %c0_18] : memref<1x192xf32, #tpu.memory_space<vmem>>, vector<1x192xf32>
    %22 = vector.broadcast %21 : vector<1x192xf32> to vector<8x192xf32>
    %23 = arith.addf %20, %22 : vector<8x192xf32>
    %24 = vector.extract_strided_slice %23 {offsets = [0, 0], sizes = [8, 96], strides = [1, 1]} : vector<8x192xf32> to vector<8x96xf32>
    %25 = arith.truncf %24 : vector<8x96xf32> to vector<8x96xbf16>
    %c0_19 = arith.constant 0 : index
    %c0_20 = arith.constant 0 : index
    %c0_21 = arith.constant 0 : index
    %c0_22 = arith.constant 0 : index
    %26 = vector.load %arg10[%c0_19, %c0_20, %c0_21, %c0_22] : memref<2x1x8x96xbf16, #tpu.memory_space<vmem>>, vector<1x1x8x96xbf16>
    %27 = vector.shape_cast %26 : vector<1x1x8x96xbf16> to vector<8x96xbf16>
    %28 = vector.shape_cast %25 : vector<8x96xbf16> to vector<1x1x8x96xbf16>
    tpu.vector_store %arg10[%c0_19, %c0_20, %c0_21, %c0_22], %28 {strides = array<i32>} : memref<2x1x8x96xbf16, #tpu.memory_space<vmem>>, vector<1x1x8x96xbf16>,
    %29 = vector.extract_strided_slice %23 {offsets = [0, 96], sizes = [8, 96], strides = [1, 1]} : vector<8x192xf32> to vector<8x96xf32>
    %30 = arith.truncf %29 : vector<8x96xf32> to vector<8x96xbf16>
    %c1 = arith.constant 1 : index
    %c0_23 = arith.constant 0 : index
    %c0_24 = arith.constant 0 : index
    %c0_25 = arith.constant 0 : index
    %31 = vector.load %arg10[%c1, %c0_23, %c0_24, %c0_25] : memref<2x1x8x96xbf16, #tpu.memory_space<vmem>>, vector<1x1x8x96xbf16>
    %32 = vector.shape_cast %31 : vector<1x1x8x96xbf16> to vector<8x96xbf16>
    %33 = vector.shape_cast %30 : vector<8x96xbf16> to vector<1x1x8x96xbf16>
    tpu.vector_store %arg10[%c1, %c0_23, %c0_24, %c0_25], %33 {strides = array<i32>} : memref<2x1x8x96xbf16, #tpu.memory_space<vmem>>, vector<1x1x8x96xbf16>,
    return
  }
  func.func @transform_0(%arg0: i32, %arg1: i32) -> (i32, i32, i32) {
    %c0_i32 = arith.constant 0 : i32
    %c0_i32_0 = arith.constant 0 : i32
    return %arg0, %arg1, %c0_i32 : i32, i32, i32
  }
  func.func @transform_1(%arg0: i32, %arg1: i32) -> (i32, i32) {
    %c0_i32 = arith.constant 0 : i32
    %c0_i32_0 = arith.constant 0 : i32
    %c0_i32_1 = arith.constant 0 : i32
    return %c0_i32, %c0_i32_0 : i32, i32
  }
  func.func @transform_2(%arg0: i32, %arg1: i32) -> (i32, i32) {
    %c0_i32 = arith.constant 0 : i32
    %c0_i32_0 = arith.constant 0 : i32
    %c0_i32_1 = arith.constant 0 : i32
    return %c0_i32, %c0_i32_0 : i32, i32
  }
  func.func @transform_3(%arg0: i32, %arg1: i32) -> (i32, i32) {
    %c0_i32 = arith.constant 0 : i32
    %c0_i32_0 = arith.constant 0 : i32
    %c0_i32_1 = arith.constant 0 : i32
    return %c0_i32, %c0_i32_0 : i32, i32
  }
  func.func @transform_4(%arg0: i32, %arg1: i32) -> (i32, i32) {
    %c0_i32 = arith.constant 0 : i32
    %c0_i32_0 = arith.constant 0 : i32
    %c0_i32_1 = arith.constant 0 : i32
    return %c0_i32, %c0_i32_0 : i32, i32
  }
  func.func @transform_5(%arg0: i32, %arg1: i32) -> (i32, i32) {
    %c0_i32 = arith.constant 0 : i32
    %c0_i32_0 = arith.constant 0 : i32
    %c0_i32_1 = arith.constant 0 : i32
    return %c0_i32, %c0_i32_0 : i32, i32
  }
  func.func @transform_6(%arg0: i32, %arg1: i32) -> (i32, i32) {
    %c0_i32 = arith.constant 0 : i32
    %c0_i32_0 = arith.constant 0 : i32
    %c0_i32_1 = arith.constant 0 : i32
    return %c0_i32, %c0_i32_0 : i32, i32
  }
  func.func @transform_7(%arg0: i32, %arg1: i32) -> (i32, i32, i32) {
    %c0_i32 = arith.constant 0 : i32
    %c0_i32_0 = arith.constant 0 : i32
    return %arg0, %c0_i32, %arg1 : i32, i32, i32
  }
  func.func @transform_8(%arg0: i32, %arg1: i32) -> (i32, i32, i32, i32) {
    %c0_i32 = arith.constant 0 : i32
    %c0_i32_0 = arith.constant 0 : i32
    %c0_i32_1 = arith.constant 0 : i32
    return %c0_i32, %arg0, %arg1, %c0_i32_0 : i32, i32, i32, i32
  }
}

</mosaic_0001>

<bundles_post_ra>
// kernel: tpu_custom_call.1
= control target key start
LH: loop header
LB: loop body
LE: loop exit
PB: predicated region body
PF: predicated region fallthrough
CT: control target
= control target key end

     0   :  { %s2008_s0 = inlined_call_operand.vmem [shape: bf16[2,8,768], index: 0, kind: input, shape index: {}]   ;;  %s2009_s1 = inlined_call_operand.hbm [shape: bf16[768,128], index: 1, kind: input, shape index: {}]   ;;  %s2010_s2 = inlined_call_operand.vmem [shape: f32[1,128], index: 2, kind: input, shape index: {}]   ;;  %s2011_s3 = inlined_call_operand.vmem [shape: f32[1,128], index: 3, kind: input, shape index: {}]   ;;  %s2012_s4 = inlined_call_operand.<no memory space> [shape: f32[1,1], index: 4, kind: input, shape index: {}]   ;;  %s2013_s5 = inlined_call_operand.vmem [shape: bf16[128,192], index: 5, kind: input, shape index: {}]   ;;  %s2014_s6 = inlined_call_operand.vmem [shape: f32[1,192], index: 6, kind: input, shape index: {}]   ;;  %s2015_s7 = inlined_call_operand.hbm [shape: f32[2,1,8], index: 7, kind: output, shape index: {0}]   ;;  %s2016_s8 = inlined_call_operand.hbm [shape: bf16[2,2,8,96], index: 8, kind: output, shape index: {1}]  }
   0x1   :  { %v14_v0 = vstv %s2012_s4 }
   0x2   :  { %15 = vst [vmem:[#allocation2] sm:$0x1] %v14_v0 }
   0x3   :  { %16 = vsyncpa [#allocation4], 0 }
   0x4   :  { %17 = vsyncpa [#allocation5], 0 }
   0x5   :  { %19 = vsyncpa [#allocation5 + $0x1], 0 }
   0x6   :  { %20 = vsyncpa [#allocation8], 0 }
   0x7   :  { %22 = vsyncpa [#allocation8 + $0x1], 0  ;;  %s1757_s29 = smov 0   ;;  %s1759_s30 = smov 0  }
   0x8   :  { %s1761_s9 = smov 0   ;;  %s1763_s10 = smov 0  }
   0x9   :  { %s1765_s11 = smov 0   ;;  %s1767_s12 = smov 0  }
   0xa LB: > { %s1241_s4 = sadd.s32 4294967295, %s1697_s12   ;;  %s1242_s13 = sadd.s32 4294967294, %s1697_s12   ;;  %s1697_s12 = sphi %s1767_s12, %s28_s12   ;;  %s1693_s11 = sphi %s1765_s11, %s2034_s11   ;;  %s1689_s10 = sphi %s1763_s10, %s2033_s10   ;;  %s1685_s9 = sphi %s1761_s9, %s2032_s9   ;;  %s1681_s30 = sphi %s1759_s30, %s2031_s30   ;;  %s1677_s29 = sphi %s1757_s29, %s2030_s29  }
   0xb   : > { %s40_s14 = sadd.s32 1, %s1693_s11  ;;  %s203_s15 = sadd.s32 1, %s1685_s9 }
   0xc   : > { %p42_p0 = scmp.ge.s32.totalorder %s40_s14, 2  ;;  %p213_p1 = scmp.ne.s32.totalorder %s1685_s9, %s1681_s30 }
   0xd   : > { %p214_p2 = scmp.eq.s32.totalorder %s1241_s4, 1  ;;  %p219_p3 = scmp.ne.s32.totalorder %s1681_s30, %s1677_s29 }
   0xe   : > { %s2036_s14 = smov (%p42_p0, %s40_s14), 0  ;;  %p220_p5 = scmp.eq.s32.totalorder %s1242_s13, 1 }
   0xf   : > { %p1797_p4 = por %p214_p2, %p213_p1  ;;  %s198_s17 = ssub.s32 %s1693_s11, %s2036_s14 }
  0x10   : > { %p1243_p6 = scmp.ge.s32.totalorder %s1697_s12, 1  ;;  %p201_p7 = scmp.eq.s32.totalorder %s198_s17, 0 }
  0x11   : > { %s2021_s16 = scalar_select %p1797_p4, 1, 0 }
  0x12   : > { %p1804_p8 = por %p220_p5, %p219_p3  ;;  %p255_p9 = scmp.lt.s32.totalorder %s1697_s12, 3 }
  0x13   : > { %s1810_s19 = scalar_select %p201_p7, %s1685_s9, %s203_s15  }
  0x14   : > { %s2022_s18 = scalar_select %p1804_p8, 1, 0 }
  0x15   : > { %p1812_p10 = pnand %p1243_p6, %p255_p9  ;;  %p1816_p11 = scmp.eq.s32.totalorder %s1241_s4, 0 }
  0x16   : > { %s1699_s22 = smov [#allocation3]   ;;  %s1555_s27 = scalar_lea.hbm %s2009_s1, 6144 }
  0x17   : > { %s2023_s20 = scalar_select %p1812_p10, 1, 0 }
  0x18   : > { %s2024_s21 = scalar_select %p1816_p11, 1, 0 }
  0x19   : > { %p1407_p12 = pneg %p1812_p10  ;;  %s267_s23 = sshll.u32 %s1699_s22, 4  ;;  %s268_s23 = int_to_ptr.vmem [resolvable:$true] %s267_s23 }
  0x1a   : > { %p1556_p0 = scmp.ne.s32.totalorder %s2009_s1, %s1555_s27  ;;  %p1562_p5 = scmp.lt.u32.totalorder %s1555_s27, %s2009_s1 }
  0x1b   : > { %p1824_p13 = pnand %p1816_p11, %p1407_p12 }
  0x1d   : > { %p1557_p1 = pneg %p1824_p13 }
  0x1f   : > { %p1558_p2 = pnand %p1557_p1, %p1556_p0 }
  0x21   : > { %p1559_p3 = pneg %p1558_p2 }
  0x23   : > { %p1564_p6 = pnand %p1562_p5, %p1559_p3 }
  0x25   : > { %1567 = shalt.err (!%p1564_p6)
}
  0x26   : > { %s1568_s17 = scalar_lea.vmem %s268_s23, 6144  ;;  %p1576_p8 = scmp.lt.s32.totalorder %s268_s23, %s268_s23 }
  0x27   : > { %p1569_p7 = scmp.ne.s32.totalorder %s268_s23, %s1568_s17  ;;  %p1577_p4 = scmp.lt.s32.totalorder %s1568_s17, %s1568_s17 }
  0x29   : > { %p1571_p9 = pnand %p1569_p7, %p1557_p1  ;;  %p1578_p11 = por %p1577_p4, %p1576_p8 }
  0x2b   : > { %p1572_p12 = pneg %p1571_p9 }
  0x2d   : > { %p1579_p10 = pnand %p1578_p11, %p1572_p12 }
  0x2f   : > { %1582 = shalt.err (!%p1579_p10)
}
  0x30   : > { %s1700_s22 = smov 64   ;;  %s1701_s25 = smov 4  }
  0x31   : > { %1410 = dma.hbm_to_vmem [thread:$0]  (!%p1824_p13), %s2009_s1, 6144, %s268_s23, [#allocation4], %s1700_s22, %s1700_s22, %s1701_s25  }
  0x32   : > { %p2026_p0 = scmp.ne.s32.totalorder %s2023_s20, 0 }
  0x33   : > { %p2027_p2 = scmp.ne.s32.totalorder (!%p2026_p0), %s2024_s21, 0 }
  0x34   : > { %310 = sbr.rel (%p2026_p0) target bundleno = 695 (0x2b7), region = 48 }
  0x3b   : > { %1664 = dma.done.wait (%p2027_p2), [#allocation4], 6144  }
  0x3c   : > { %1666 = vsyncadd (%p2027_p2), [#allocation4], 4294961152  ;;  %v1477_v1 = vld [vmem:[#allocation3 + $0x40] sm:$0xff]   ;;  %v1481_v5 = vld [vmem:[#allocation3 + $0x48] sm:$0xff]   ;;  %p352_p4 = scmp.lt.s32.totalorder %s1689_s10, 1  ;;  %s1915_s24 = sand.u32 1, %s1681_s30  }
  0x3d   : > { %v1478_v2 = vld [vmem:[#allocation3] sm:$0xff]   ;;  %1330 = vmatprep.subr.bf16.mxu0 %v1477_v1  ;;  %v1482_v6 = vld [vmem:[#allocation3 + $0x8] sm:$0xff]   ;;  %v1485_v9 = vld [vmem:[#allocation3 + $0x50] sm:$0xff]   ;;  %vm919_vm0 = vcmask 57344   ;;  %s1325_s15 = sshll.u32 %s1689_s10, 4  ;;  %s1089_s28 = scalar_lea.sflag [#allocation5], %s1915_s24 }
  0x3e   : > { %v1479_v3 = vld [vmem:[#allocation3 + $0xc0] sm:$0xff]   ;;  %1331 = vmatpush3.bf16.msra.mxu0 %v1478_v2  ;;  %v1483_v7 = vld [vmem:[#allocation3 + $0xc8] sm:$0xff]   ;;  %v1486_v10 = vld [vmem:[#allocation3 + $0x10] sm:$0xff]   ;;  %s353_s20 = scalar_select %p352_p4, %s1689_s10, 1 }
  0x3f   : > { %v1480_v4 = vld [vmem:[#allocation3 + $0x80] sm:$0xff]   ;;  %1352 = vmatprep.subr.bf16.mxu1 %v1479_v3  ;;  %1332 = vmatprep.subr.bf16.mxu0 %v1481_v5  ;;  %v1484_v8 = vld [vmem:[#allocation3 + $0x88] sm:$0xff]   ;;  %v1487_v11 = vld [vmem:[#allocation3 + $0xd0] sm:$0xff]   ;;  %s1925_s26 = scalar_lea.hbm %s2015_s7, %s1325_s15  ;;  %p2028_p10 = scmp.ne.s32.totalorder %s2021_s16, 0 }
  0x40   : > { %1353 = vmatpush3.bf16.msra.mxu1 %v1480_v4  ;;  %v1488_v12 = vld [vmem:[#allocation3 + $0x90] sm:$0xff]   ;;  %v1489_v13 = vld [vmem:[#allocation3 + $0x58] sm:$0xff]   ;;  %v1493_v17 = vld [vmem:[#allocation3 + $0x60] sm:$0xff]   ;;  %s1396_s21 = smul.u32 24, %s353_s20 }
  0x41   : > { %1354 = vmatprep.subr.bf16.mxu1 %v1483_v7  ;;  %v1490_v14 = vld [vmem:[#allocation3 + $0x18] sm:$0xff]   ;;  %v1494_v18 = vld [vmem:[#allocation3 + $0x20] sm:$0xff]   ;;  %v1497_v21 = vld [vmem:[#allocation3 + $0x68] sm:$0xff]  }
  0x42   : > { %1333 = vmatpush3.bf16.msra.mxu0 %v1482_v6  ;;  %v1491_v15 = vld [vmem:[#allocation3 + $0xd8] sm:$0xff]   ;;  %v1495_v19 = vld [vmem:[#allocation3 + $0xe0] sm:$0xff]   ;;  %v1498_v22 = vld [vmem:[#allocation3 + $0x28] sm:$0xff]   ;;  %s1855_s27 = scalar_lea.vmem %s2008_s0, %s1396_s21  ;;  %s1703_s21 = smov [#allocation6]  }
  0x43   : > { %1334 = vmatprep.subr.bf16.mxu0 %v1485_v9  ;;  %v1492_v16 = vld [vmem:[#allocation3 + $0x98] sm:$0xff]   ;;  %v1496_v20 = vld [vmem:[#allocation3 + $0xa0] sm:$0xff]   ;;  %v1499_v23 = vld [vmem:[#allocation3 + $0xe8] sm:$0xff]  }
  0x44   : > { %1355 = vmatpush3.bf16.msra.mxu1 %v1484_v8  ;;  %v1500_v24 = vld [vmem:[#allocation3 + $0xa8] sm:$0xff]   ;;  %v1501_v25 = vld [vmem:[#allocation3 + $0x70] sm:$0xff]   ;;  %v1505_v29 = vld [vmem:[#allocation3 + $0x78] sm:$0xff]  }
  0x45   : > { %1356 = vmatprep.subr.bf16.mxu1 %v1487_v11  ;;  %v1502_v26 = vld [vmem:[#allocation3 + $0x30] sm:$0xff]   ;;  %v1506_v30 = vld [vmem:[#allocation3 + $0x38] sm:$0xff]   ;;  %v1511_v36 = vld [vmem:[#allocation3 + $0x140] sm:$0xff]  }
  0x46   : > { %1335 = vmatpush3.bf16.msra.mxu0 %v1486_v10  ;;  %v1503_v27 = vld [vmem:[#allocation3 + $0xf0] sm:$0xff]   ;;  %v1507_v31 = vld [vmem:[#allocation3 + $0xf8] sm:$0xff]   ;;  %v363_v37 = vld [vmem:[%s1855_s27 + $0x8] sm:$0xff]  ;;  %v1702_v10 = vmov 0  }
  0x47   : > { %1336 = vmatprep.subr.bf16.mxu0 %v1489_v13  ;;  %v1504_v28 = vld [vmem:[#allocation3 + $0xb0] sm:$0xff]   ;;  %v362_v32 = vld [vmem:[%s1855_s27] sm:$0xff]  ;;  %v1253_v38 = vcombine.low %v363_v37, %v363_v37  ;;  %v1254_v39 = vcombine.high %v363_v37, %v363_v37  ;;  %v1515_v41 = vld [vmem:[#allocation3 + $0x148] sm:$0xff]  }
  0x48   : > { %1357 = vmatpush3.bf16.msra.mxu1 %v1488_v12  ;;  %v1251_v33 = vcombine.low %v362_v32, %v362_v32  ;;  %v1252_v34 = vcombine.high %v362_v32, %v362_v32  ;;  %v1510_v35 = vld [vmem:[#allocation3 + $0xb8] sm:$0xff]   ;;  %v1514_v40 = vld [vmem:[#allocation3 + $0x100] sm:$0xff]   ;;  %v1516_v42 = vld [vmem:[#allocation3 + $0x108] sm:$0xff]  }
  0x49   : > { %1358 = vmatprep.subr.bf16.mxu1 %v1491_v15  ;;  %849 = vmatprep.mubr.bf16.mxu1 %v1254_v39  ;;  %v1517_v43 = vld [vmem:[#allocation3 + $0x150] sm:$0xff]   ;;  %v1519_v45 = vld [vmem:[#allocation3 + $0x158] sm:$0xff]   ;;  %v1521_v47 = vld [vmem:[#allocation3 + $0x160] sm:$0xff]  }
  0x4a   : > { %1337 = vmatpush3.bf16.msra.mxu0 %v1490_v14  ;;  %809 = vmatprep.mubr.bf16.mxu0 %v1252_v34  ;;  %v1518_v44 = vld [vmem:[#allocation3 + $0x110] sm:$0xff]   ;;  %v1520_v46 = vld [vmem:[#allocation3 + $0x118] sm:$0xff]   ;;  %v1522_v48 = vld [vmem:[#allocation3 + $0x120] sm:$0xff]   ;;  %v912_v34 = vlaneseq }
  0x4b   : > { %1338 = vmatprep.subr.bf16.mxu0 %v1493_v17  ;;  %v1523_v49 = vld [vmem:[#allocation3 + $0x168] sm:$0xff]   ;;  %v1525_v53 = vld [vmem:[#allocation3 + $0x170] sm:$0xff]   ;;  %v1527_v55 = vld [vmem:[#allocation3 + $0x178] sm:$0xff]  }
  0x4c   : > { %1359 = vmatpush3.bf16.msra.mxu1 %v1492_v16  ;;  %v364_v50 = vld [vmem:[%s1855_s27 + $0x10] sm:$0xff]  ;;  %v1528_v56 = vld [vmem:[#allocation3 + $0x138] sm:$0xff]   ;;  %v1533_v59 = vld [vmem:[%s2013_s5 + $0x4] ss:$8 sps:$4 sm:$0xff]   ;;  %s344_s27 = scalar_lea.vmem [#allocation6], %s1915_s24 }
  0x4d   : > { %1360 = vmatprep.subr.bf16.mxu1 %v1495_v19  ;;  %v1256_v51 = vcombine.high %v364_v50, %v364_v50  ;;  %v1524_v52 = vld [vmem:[#allocation3 + $0x128] sm:$0xff]   ;;  %v1526_v54 = vld [vmem:[#allocation3 + $0x130] sm:$0xff]   ;;  %v1255_v57 = vcombine.low %v364_v50, %v364_v50  ;;  %v907_v11 = vld [vmem:[#allocation2] sm:$0x1]  ;;  %s1107_s17 = sshll.u32 %s344_s27, 4  ;;  %s1927_s17 = int_to_ptr.vmem [resolvable:$true] %s1107_s17 }
  0x4e   : > { %1339 = vmatpush3.bf16.msra.mxu0 %v1494_v18  ;;  %v1531_v58 = vld [vmem:[%s2013_s5] ss:$8 sps:$4 sm:$0xff]   ;;  %v1536_v60 = vld [vmem:[%s2013_s5 + $0x14] ss:$8 sps:$4 sm:$0xff]   ;;  %v1534_v61 = vld [vmem:[%s2013_s5 + $0x10] ss:$8 sps:$4 sm:$0xff]   ;;  %1397 = vpush %v907_v11 }
  0x4f   : > { %1340 = vmatprep.subr.bf16.mxu0 %v1497_v21  ;;  %v1539_v62 = vld [vmem:[%s2013_s5 + $0x24] ss:$8 sps:$4 sm:$0xff]   ;;  %v1537_v63 = vld [vmem:[%s2013_s5 + $0x20] ss:$8 sps:$4 sm:$0xff]   ;;  %v1542_v0 = vld [vmem:[%s2013_s5 + $0x34] ss:$8 sps:$4 sm:$0xff]  }
  0x50   : > { %1361 = vmatpush3.bf16.msra.mxu1 %v1496_v20  ;;  %v1540_v1 = vld [vmem:[%s2013_s5 + $0x30] ss:$8 sps:$4 sm:$0xff]   ;;  %v1545_v2 = vld [vmem:[%s2013_s5 + $0x44] ss:$8 sps:$4 sm:$0xff]   ;;  %v1543_v3 = vld [vmem:[%s2013_s5 + $0x40] ss:$8 sps:$4 sm:$0xff]  }
  0x51   : > { %1362 = vmatprep.subr.bf16.mxu1 %v1499_v23  ;;  %v1548_v4 = vld [vmem:[%s2013_s5 + $0x54] ss:$8 sps:$4 sm:$0xff]   ;;  %v1546_v5 = vld [vmem:[%s2013_s5 + $0x50] ss:$8 sps:$4 sm:$0xff]   ;;  %v1551_v6 = vld [vmem:[%s2013_s5 + $0x64] ss:$8 sps:$4 sm:$0xff]  }
  0x52   : > { %1341 = vmatpush3.bf16.msra.mxu0 %v1498_v22  ;;  %v1549_v7 = vld [vmem:[%s2013_s5 + $0x60] ss:$8 sps:$4 sm:$0xff]   ;;  %v1554_v8 = vld [vmem:[%s2013_s5 + $0x74] ss:$8 sps:$4 sm:$0xff]   ;;  %v1552_v9 = vld [vmem:[%s2013_s5 + $0x70] ss:$8 sps:$4 sm:$0xff]  }
  0x53   : > { %1342 = vmatprep.subr.bf16.mxu0 %v1501_v25  ;;  %v1250_v13 = vld [vmem:[%s2010_s2] ss:$0 sm:$0xff]  ;;  %s1583_s20 = scalar_lea.vmem %s1927_s17, 16 }
  0x54   : > { %1363 = vmatpush3.bf16.msra.mxu1 %v1500_v24  ;;  %p1584_p8 = scmp.ne.s32.totalorder %s1927_s17, %s1583_s20 }
  0x55   : > { %1364 = vmatprep.subr.bf16.mxu1 %v1503_v27 }
  0x56   : > { %1343 = vmatpush3.bf16.msra.mxu0 %v1502_v26  ;;  %p1585_p11 = pnand %p1584_p8, %p2028_p10 }
  0x57   : > { %1344 = vmatprep.subr.bf16.mxu0 %v1505_v29 }
  0x58   : > { %1365 = vmatpush3.bf16.msra.mxu1 %v1504_v28  ;;  %p1586_p13 = pneg %p1585_p11 }
  0x59   : > { %1366 = vmatprep.subr.bf16.mxu1 %v1507_v31 }
  0x5a   : > { %1345 = vmatpush3.bf16.msra.mxu0 %v1506_v30  ;;  %v1305_v30 = vld [vmem:[%s2011_s3] ss:$0 sm:$0xff] }
  0x5b   : > { %1374 = vmatprep.subr.bf16.mxu0 %v1511_v36  ;;  %v915_v36 = vshrl.u32 %v912_v34, 7 }
  0x5c   : > { %1367 = vmatpush3.bf16.msra.mxu1 %v1510_v35  ;;  %v913_v35 = vand.u32 127, %v912_v34 }
  0x5d   : > { %810 = vmatmul.mubr.bf16.vlgmr.msra.gmra.mrb[0].mxu0 %v1251_v33  ;;  %1030 = vmatprep.subr.bf16.mxu1 %v1533_v59 }
  0x5e   : > { %1375 = vmatpush3.bf16.msra.mxu0 %v1514_v40  ;;  %889 = vmatprep.mubr.bf16.mxu0 %v1256_v51 }
  0x5f   : > { %850 = vmatmul.mubr.bf16.vlgmr.msra.gmra.mrb[0].mxu1 %v1253_v38  ;;  %1376 = vmatprep.subr.bf16.mxu0 %v1515_v41  ;;  %v916_v38 = vsub.s32 %v913_v35, %v915_v36 }
  0x60   : > { %1031 = vmatpush1.bf16.msra.mxu1 %v1531_v58  ;;  %1062 = vmatprep.mubr.bf16.mxu1 %v1702_v10 }
  0x61   : > { %1032 = vmatprep.subr.bf16.mxu1 %v1536_v60 }
  0x62   : > { %1377 = vmatpush3.bf16.msra.mxu0 %v1516_v42  ;;  %v942_v42 = vsub.s32 0, %v915_v36 }
  0x63   : > { %1378 = vmatprep.subr.bf16.mxu0 %v1517_v43  ;;  %v938_v43 = vld [vmem:[%s2014_s6] sm:$0x3] }
  0x64   : > { %1033 = vmatpush1.bf16.msra.mxu1 %v1534_v61 }
  0x65   : > { %1034 = vmatprep.subr.bf16.mxu1 %v1539_v62 }
  0x66   : > { %1379 = vmatpush3.bf16.msra.mxu0 %v1518_v44  ;;  %v946_v44 = vsub.s32 1, %v915_v36 }
  0x67   : > { %1380 = vmatprep.subr.bf16.mxu0 %v1519_v45  ;;  %v943_v45 = vrot.slane %v938_v43, %v942_v42 }
  0x68   : > { %1035 = vmatpush1.bf16.msra.mxu1 %v1537_v63 }
  0x69   : > { %1036 = vmatprep.subr.bf16.mxu1 %v1542_v0 }
  0x6a   : > { %1381 = vmatpush3.bf16.msra.mxu0 %v1520_v46  ;;  %v947_v46 = vrot.slane %v938_v43, %v946_v44 }
  0x6b   : > { %1382 = vmatprep.subr.bf16.mxu0 %v1521_v47 }
  0x6c   : > { %1037 = vmatpush1.bf16.msra.mxu1 %v1540_v1 }
  0x6d   : > { %1038 = vmatprep.subr.bf16.mxu1 %v1545_v2 }
  0x6e   : > { %1383 = vmatpush3.bf16.msra.mxu0 %v1522_v48 }
  0x6f   : > { %1384 = vmatprep.subr.bf16.mxu0 %v1523_v49 }
  0x70   : > { %1039 = vmatpush1.bf16.msra.mxu1 %v1543_v3 }
  0x71   : > { %1040 = vmatprep.subr.bf16.mxu1 %v1548_v4 }
  0x72   : > { %1385 = vmatpush3.bf16.msra.mxu0 %v1524_v52 }
  0x73   : > { %1386 = vmatprep.subr.bf16.mxu0 %v1525_v53 }
  0x74   : > { %1041 = vmatpush1.bf16.msra.mxu1 %v1546_v5 }
  0x75   : > { %1042 = vmatprep.subr.bf16.mxu1 %v1551_v6 }
  0x76   : > { %1387 = vmatpush3.bf16.msra.mxu0 %v1526_v54 }
  0x77   : > { %1388 = vmatprep.subr.bf16.mxu0 %v1527_v55 }
  0x78   : > { %1043 = vmatpush1.bf16.msra.mxu1 %v1549_v7 }
  0x79   : > { %1044 = vmatprep.subr.bf16.mxu1 %v1554_v8 }
  0x7a   : > { %1389 = vmatpush3.bf16.msra.mxu0 %v1528_v56 }
  0x7c   : > { %1045 = vmatpush1.bf16.msra.mxu1 %v1552_v9 }
  0x7d   : > { %890 = vmatmul.mubr.bf16.vlgmr.msra.gmra.mrb[4].mxu0 %v1255_v57 }
  0x7f   : > { %s1398_s23 = spop %1397 }
  0x80   : > { %v909_v37 = vstv %s1398_s23  ;;  %s1587_s23 = sshll.u32 %s1703_s21, 4  ;;  %s1588_s23 = int_to_ptr.vmem [resolvable:$false] %s1587_s23 }
  0x81   : > { %p1590_p1 = scmp.lt.s32.totalorder %s1927_s17, %s1588_s23 }
 0x130   : > { %v1346_v12 = vpop.f32.mrb[0].mxu0 }
 0x131   : > { %v1347_v14 = vpop.f32.mrb[1].mxu0 }
 0x132   : > { %v1348_v15 = vadd.f32 %v1347_v14, %v1346_v12  ;;  %v1349_v16 = vpop.f32.mrb[2].mxu0  ;;  %v1368_v17 = vpop.f32.mrb[0].mxu1 }
 0x133   : > { %v1350_v18 = vpop.f32.mrb[3].mxu0  ;;  %v1369_v19 = vpop.f32.mrb[1].mxu1 }
 0x134   : > { %v812_v20 = vadd.f32 %v1348_v15, %v1250_v13  ;;  %v1370_v21 = vadd.f32 %v1369_v19, %v1368_v17  ;;  %v1371_v22 = vpop.f32.mrb[2].mxu1 }
 0x135   : > { %v1372_v23 = vpop.f32.mrb[3].mxu1 }
 0x136   : > { %v852_v24 = vadd.f32 %v1370_v21, %v812_v20 }
 0x150   : > { %v1390_v25 = vpop.f32.mrb[4].mxu0 }
 0x151   : > { %v1391_v26 = vpop.f32.mrb[5].mxu0 }
 0x152   : > { %v1392_v27 = vadd.f32 %v1391_v26, %v1390_v25  ;;  %v1393_v28 = vpop.f32.mrb[6].mxu0 }
 0x153   : > { %v1394_v29 = vpop.f32.mrb[7].mxu0 }
 0x154   : > { %v892_v31 = vadd.f32 %v1392_v27, %v852_v24 }
 0x156   : > { %v921_v32 = vpack.c.bf16 %v892_v31, %v892_v31  ;;  %v904_v33 = vmul.f32 %v1305_v30, %v892_v31 }
 0x158   : > { %1063 = vmatmul.mubr.bf16.vlgmr.msra.gmra.mrb[4].mxu1 %v921_v32  ;;  %905 = vadd.xlane.f32.xlu0 %v904_v33 }
 0x1e5   : > { %v906_v39 = vpop.xlane.xlu0 %905 }
 0x1e6   : > { %v910_v40 = vadd.f32 %v909_v37, %v906_v39 }
 0x1e8   : > { %v917_v41 = vrot.slane %v910_v40, %v916_v38 }
 0x1ea   : > { %920 = vst.msk [vmem:[%s344_s27] sm:$0x1] %vm919_vm0, %v917_v41  ;;  %s1589_s27 = scalar_lea.vmem %s1588_s23, 32 }
 0x1eb   : > { %p1591_p3 = scmp.lt.s32.totalorder %s1589_s27, %s1583_s20 }
 0x1ed   : > { %p1592_p5 = por %p1591_p3, %p1590_p1 }
 0x1ef   : > { %p1593_p6 = pnand %p1592_p5, %p1586_p13 }
 0x1f1   : > { %1596 = shalt.err (!%p1593_p6)
}
 0x1f2   : > { %s1597_s4 = scalar_lea.hbm %s1925_s26, 16  ;;  %s1601_s22 = scalar_lea.hbm %s2015_s7, 32 }
 0x1f3   : > { %p1598_p7 = scmp.ne.s32.totalorder %s1925_s26, %s1597_s4  ;;  %p1602_p0 = scmp.lt.u32.totalorder %s1925_s26, %s2015_s7 }
 0x1f4   : > { %p1603_p2 = scmp.lt.u32.totalorder %s1601_s22, %s1597_s4  ;;  %p1605_p8 = scmp.lt.u32.totalorder %s1597_s4, %s1925_s26 }
 0x1f5   : > { %p1599_p9 = pnand %p1598_p7, %p2028_p10 }
 0x1f6   : > { %p1604_p4 = por %p1603_p2, %p1602_p0 }
 0x1f7   : > { %p1600_p12 = pneg %p1599_p9 }
 0x1f8   : > { %p1606_p11 = por %p1605_p8, %p1604_p4 }
 0x1fa   : > { %p1607_p13 = pnand %p1606_p11, %p1600_p12 }
 0x1fc   : > { %1610 = shalt.err (!%p1607_p13)
}
 0x1fd   : > { %1403 = dma.vmem_to_hbm [thread:$0]  (%p2028_p10), %s1927_s17, 16, %s1925_s26, %s1089_s28   ;;  %vm1072_vm1 = vcmask 781312   ;;  %vm1083_vm2 = vcmask 261120  }
 0x1fe   : > { %s1248_s20 = sshll.u32 %s1915_s24, 3  ;;  %s1704_s27 = smov 32  }
 0x1ff   : > { %s351_s23 = scalar_lea.vmem [#allocation7], %s1248_s20  ;;  %s1326_s17 = sshll.u32 %s1689_s10, 6 }
 0x200   : > { %s1120_s4 = sshll.u32 %s351_s23, 4  ;;  %s1959_s13 = scalar_lea.hbm %s2016_s8, %s1326_s17  ;;  %s1954_s4 = int_to_ptr.vmem [resolvable:$true] %s1120_s4 }
 0x201   : > { %s1093_s15 = scalar_lea.sflag [#allocation8], %s1915_s24  ;;  %s1611_s22 = scalar_lea.vmem %s1954_s4, 128 }
 0x202   : > { %p1612_p1 = scmp.ne.s32.totalorder %s1954_s4, %s1611_s22  ;;  %s1705_s10 = smov [#allocation7]  }
 0x203   : > { %s1615_s25 = sshll.u32 %s1705_s10, 4  ;;  %s1616_s25 = int_to_ptr.vmem [resolvable:$false] %s1615_s25 }
 0x204   : > { %p1613_p3 = pnand %p1612_p1, %p2028_p10  ;;  %s1617_s21 = scalar_lea.vmem %s1616_s25, 256 }
 0x205   : > { %p1618_p6 = scmp.lt.s32.totalorder %s1954_s4, %s1616_s25  ;;  %p1619_p7 = scmp.lt.s32.totalorder %s1617_s21, %s1611_s22 }
 0x206   : > { %p1614_p5 = pneg %p1613_p3 }
 0x207   : > { %p1620_p9 = por %p1619_p7, %p1618_p6 }
 0x209   : > { %p1621_p12 = pnand %p1620_p9, %p1614_p5 }
 0x22b   : > { %v1064_v47 = vpop.f32.mrb[4].mxu1 }
 0x22c   : > { %v1065_v48 = vadd.f32 %v1064_v47, %v943_v45  ;;  %v1066_v49 = vpop.f32.mrb[5].mxu1 }
 0x22d   : > { %v1067_v50 = vadd.f32 %v1066_v49, %v947_v46  ;;  %v1068_v51 = vpop.f32.mrb[6].mxu1 }
 0x22e   : > { %v1071_v52 = vpack.c.bf16 %v1065_v48, %v1065_v48  ;;  %v1069_v53 = vpop.f32.mrb[7].mxu1 }
 0x22f   : > { %v1329_v54 = vpack.c.bf16 %v1067_v50, %v1065_v48 }
 0x230   : > { %1073 = vst.msk [vmem:[%s351_s23] sm:$0xf] %vm1072_vm1, %v1071_v52 }
 0x231   : > { %1080 = vrot.lane.b32.xlu0 %v1329_v54, %s1704_s27 }
 0x2a3   : > { %v1081_v55 = vpop.permute.xlu0 %1080 }
 0x2a4   : > { %v1082_v56 = vrot.slane %v1081_v55, 4 }
 0x2a6   : > { %v1084_v57 = vsel %vm1083_vm2, %v1081_v55, %v1082_v56 }
 0x2a7   : > { %1323 = vst.msk [vmem:[%s351_s23 + $0x4] sm:$0xf] %vm1072_vm1, %v1084_v57 }
 0x2a8   : > { %1624 = shalt.err (!%p1621_p12)
}
 0x2a9   : > { %s1625_s20 = scalar_lea.hbm %s1959_s13, 128  ;;  %s1629_s17 = scalar_lea.hbm %s2016_s8, 256 }
 0x2aa   : > { %p1626_p0 = scmp.ne.s32.totalorder %s1959_s13, %s1625_s20  ;;  %p1630_p8 = scmp.lt.u32.totalorder %s1959_s13, %s2016_s8 }
 0x2ab   : > { %p1631_p11 = scmp.lt.u32.totalorder %s1629_s17, %s1625_s20  ;;  %p1633_p1 = scmp.lt.u32.totalorder %s1625_s20, %s1959_s13 }
 0x2ac   : > { %p1627_p2 = pnand %p1626_p0, %p2028_p10 }
 0x2ad   : > { %p1632_p13 = por %p1631_p11, %p1630_p8 }
 0x2ae   : > { %p1628_p4 = pneg %p1627_p2 }
 0x2af   : > { %p1634_p3 = por %p1633_p1, %p1632_p13 }
 0x2b1   : > { %p1635_p5 = pnand %p1634_p3, %p1628_p4 }
 0x2b3   : > { %1638 = shalt.err (!%p1635_p5)
}
 0x2b4   : > { %s1706_s22 = smov 64   ;;  %s1707_s10 = smov 128  }
 0x2b5   : > { %s1708_s25 = smov 4  }
 0x2b6   : > { %1404 = dma.vmem_to_hbm [thread:$0]  (%p2028_p10), %s1954_s4, 128, %s1959_s13, %s1093_s15, %s1706_s22, %s1707_s10, %s1708_s25  }
 0x2b7 PF: > { %p1420_p6 = scmp.ge.s32.totalorder %s1697_s12, 2  ;;  %s1135_s21 = sand.u32 1, %s1677_s29  }
 0x2b8   : > { %p2029_p7 = scmp.ne.s32.totalorder %s2022_s18, 0  ;;  %s1136_s20 = scalar_lea.sflag [#allocation5], %s1135_s21 }
 0x2ba   : > { %p1412_p9 = pnand %p1420_p6, %p2029_p7 }
 0x2bc   : > { %1668 = dma.done.wait (!%p1412_p9), %s1136_s20, 16  }
 0x2bd   : > { %1670 = vsyncadd (!%p1412_p9), %s1136_s20, 4294967280  ;;  %s1144_s23 = scalar_lea.sflag [#allocation8], %s1135_s21 }
 0x2be   : > { %1672 = dma.done.wait (!%p1412_p9), %s1144_s23, 128  }
 0x2bf   : > { %1674 = vsyncadd (!%p1412_p9), %s1144_s23, 4294967168  ;;  %s28_s12 = sadd.s32 1, %s1697_s12   ;;  %s2030_s29 = smov %s1681_s30 }
 0x2c0   : > { %p25_p12 = scmp.ge.s32.totalorder %s28_s12, 4   ;;  %s2031_s30 = smov %s1685_s9 }
 0x2c1   : > { %s2032_s9 = smov %s1810_s19  ;;  %s2033_s10 = smov %s1693_s11 }
 0x2c2   : > { %s2034_s11 = smov %s2036_s14  ;;  %27 = sbr.rel (!%p25_p12) target bundleno = 10 (0xa), region = 106 }
 0x2c9   :  { %1149 = vsyncpa [#allocation4], 1 }
 0x2ca   :  { %1151 = vsyncpa [#allocation4 + $0x1], 1 }
 0x2cb   :  { %1152 = vsyncpa [#allocation5], 1 }
 0x2cc   :  { %1154 = vsyncpa [#allocation5 + $0x1], 1 }
 0x2cd   :  { %1155 = vsyncpa [#allocation8], 1 }
 0x2ce   :  { %1157 = vsyncpa [#allocation8 + $0x1], 1 }

</bundles_post_ra>
